<compile_context>
chip_gen: v7x
topology: tpu7x:2x2x1
jax: 0.10.0
libtpu: 0.0.40
codegen_flags: <defaults>
</compile_context>

<pallas_src>
import jax
import jax.numpy as jnp
from jax.experimental import pallas as pl
from jax.experimental.pallas import tpu as pltpu

FPAD = 128   # padded hidden width (one vreg lane row)
KPAD = 8     # padded input-feature width for the first contraction


def _mlp_kernel(seed_ref,                 # SMEM (1,) int32
                x_ref,                    # VMEM (B, 8)      f32
                w1_ref,                   # VMEM (8, 128)    bf16
                w2_ref,                   # VMEM (128, 128)  bf16
                w3_ref,                   # VMEM (128, 128)  bf16
                vecs_ref,                 # VMEM (8, 128)    f32  [b1,g1,be1,b2,g2,be2,b3,0]
                o_ref):                   # VMEM (B, 128)    f32, only col 0 valid
    eps = 1e-5
    inv_keep = 1.0 / 0.9                  # dropout p = 0.1

    vecs = vecs_ref[...]
    b1, g1, be1 = vecs[0:1, :], vecs[1:2, :], vecs[2:3, :]
    b2, g2, be2 = vecs[3:4, :], vecs[4:5, :], vecs[5:6, :]
    b3 = vecs[6:7, :]

    x = x_ref[...]

    # ----- layer_1 + ReLU (bf16 MXU inputs, f32 accumulate) ---------------
    h = jnp.dot(x.astype(jnp.bfloat16), w1_ref[...],
                preferred_element_type=jnp.float32) + b1
    h = jnp.maximum(h, 0.0)

    # ----- batchnorm1 (training mode, biased batch stats, fused affine) ---
    mu = jnp.mean(h, axis=0, keepdims=True)
    var = jnp.mean(h * h, axis=0, keepdims=True) - mu * mu
    scale = g1 * jax.lax.rsqrt(var + eps)
    h = h * scale + (be1 - mu * scale)

    # ----- layer_2 + ReLU --------------------------------------------------
    h = jnp.dot(h.astype(jnp.bfloat16), w2_ref[...],
                preferred_element_type=jnp.float32) + b2
    h = jnp.maximum(h, 0.0)

    # ----- batchnorm2 -------------------------------------------------------
    mu = jnp.mean(h, axis=0, keepdims=True)
    var = jnp.mean(h * h, axis=0, keepdims=True) - mu * mu
    scale = g2 * jax.lax.rsqrt(var + eps)
    h = h * scale + (be2 - mu * scale)

    # ----- dropout p=0.1 (training mode) ------------------------------------
    # Portable counter-hash PRNG (plain int32/uint32 VPU ops, seed from SMEM).
    # TODO(synk): mask stream differs from torch's RNG; only the distribution matches.
    seed = seed_ref[0].astype(jnp.uint32)
    r = jax.lax.broadcasted_iota(jnp.uint32, h.shape, 0)
    c = jax.lax.broadcasted_iota(jnp.uint32, h.shape, 1)
    z = (r * jnp.uint32(0x9E3779B1) + c * jnp.uint32(0x85EBCA77)
         + seed * jnp.uint32(0xC2B2AE3D) + jnp.uint32(0x27D4EB2F))
    z = z ^ (z >> 15)
    z = z * jnp.uint32(0x2C1B3C6D)
    z = z ^ (z >> 12)
    z = z * jnp.uint32(0x297A2D39)
    z = z ^ (z >> 15)
    u = (z >> 9).astype(jnp.int32)                      # uniform in [0, 2^23)
    keep = (u >= jnp.int32(838861)).astype(jnp.float32)  # drop prob ~= 0.1
    h = h * keep * inv_keep

    # ----- layer_out ---------------------------------------------------------
    o_ref[...] = jnp.dot(h.astype(jnp.bfloat16), w3_ref[...],
                         preferred_element_type=jnp.float32) + b3


def prepare_params(params):
    """One-time padding + bf16 cast of parameters (hoisted out of the hot path)."""
    w1 = jnp.zeros((KPAD, FPAD), jnp.float32).at[:7, :49].set(params["w1"])
    w2 = jnp.zeros((FPAD, FPAD), jnp.float32).at[:49, :49].set(params["w2"])
    w3 = jnp.zeros((FPAD, FPAD), jnp.float32).at[:49, :1].set(params["w3"])

    vecs = jnp.zeros((8, FPAD), jnp.float32)
    vecs = vecs.at[0, :49].set(params["b1"])
    vecs = vecs.at[1, :49].set(params["g1"])     # gamma padded with 0 -> dead lanes stay 0
    vecs = vecs.at[2, :49].set(params["be1"])
    vecs = vecs.at[3, :49].set(params["b2"])
    vecs = vecs.at[4, :49].set(params["g2"])
    vecs = vecs.at[5, :49].set(params["be2"])
    vecs = vecs.at[6, :1].set(params["b3"])

    return {
        "w1": w1.astype(jnp.bfloat16),
        "w2": w2.astype(jnp.bfloat16),
        "w3": w3.astype(jnp.bfloat16),
        "vecs": vecs,
    }


@jax.jit
def binary_classification_forward(x, padded, seed):
    """x: (B, 7) float32, padded: prepare_params() output, seed: int32 scalar.
    Returns (B, 1) float32 (training-mode forward: batch-stat BN + dropout)."""
    B, f_in = x.shape
    assert B % 8 == 0, "batch must be a multiple of 8 (sublane alignment / exact BN stats)"
    assert f_in == 7

    xp = jnp.pad(x, ((0, 0), (0, KPAD - f_in)))
    seed_arr = jnp.asarray(seed, jnp.int32).reshape((1,))

    smem = pl.BlockSpec(memory_space=pltpu.MemorySpace.SMEM)
    vmem = pl.BlockSpec(memory_space=pltpu.MemorySpace.VMEM)

    out = pl.pallas_call(
        _mlp_kernel,
        out_shape=jax.ShapeDtypeStruct((B, FPAD), jnp.float32),
        in_specs=[smem, vmem, vmem, vmem, vmem, vmem],
        out_specs=vmem,
    )(seed_arr, xp, padded["w1"], padded["w2"], padded["w3"], padded["vecs"])

    return out[:, :1]


def init_params(key):
    """Deterministic init mimicking PyTorch defaults (Linear: U(-1/sqrt(fan_in), ...))."""
    ks = jax.random.split(key, 6)

    def linear(kw, kb, fan_in, fan_out):
        bound = 1.0 / (fan_in ** 0.5)
        w = jax.random.uniform(kw, (fan_in, fan_out), jnp.float32, -bound, bound)
        b = jax.random.uniform(kb, (fan_out,), jnp.float32, -bound, bound)
        return w, b

    w1, b1 = linear(ks[0], ks[1], 7, 49)
    w2, b2 = linear(ks[2], ks[3], 49, 49)
    w3, b3 = linear(ks[4], ks[5], 49, 1)
    return {
        "w1": w1, "b1": b1,
        "g1": jnp.ones((49,), jnp.float32), "be1": jnp.zeros((49,), jnp.float32),
        "w2": w2, "b2": b2,
        "g2": jnp.ones((49,), jnp.float32), "be2": jnp.zeros((49,), jnp.float32),
        "w3": w3, "b3": b3,
    }


if __name__ == "__main__":
    key = jax.random.PRNGKey(0)
    k_param, k_x = jax.random.split(key)

    params = init_params(k_param)
    padded = prepare_params(params)          # one-time padding / bf16 cast
    x = jax.random.normal(k_x, (16, 7), jnp.float32)   # batch=16, 7 input features

    y = binary_classification_forward(x, padded, jnp.array(0, jnp.int32))
    y = jax.block_until_ready(y)

    assert y.shape == (16, 1)
    assert bool(jnp.all(jnp.isfinite(y)))
    print("KERNEL_OK")
</pallas_src>

<mosaic_0001>
module attributes {stable_mosaic.version = 11 : i64} {
  func.func @_mlp_kernel(%arg0: memref<1xi32, #tpu.memory_space<smem>>, %arg1: memref<16x8xf32, #tpu.memory_space<vmem>>, %arg2: memref<8x128xbf16, #tpu.memory_space<vmem>>, %arg3: memref<128x128xbf16, #tpu.memory_space<vmem>>, %arg4: memref<128x128xbf16, #tpu.memory_space<vmem>>, %arg5: memref<8x128xf32, #tpu.memory_space<vmem>>, %arg6: memref<16x128xf32, #tpu.memory_space<vmem>>) attributes {dimension_semantics = [], scalar_prefetch = 0 : i64, scratch_operands = 0 : i64, tpu.core_type = #tpu.core_type<tc>} {
    %c0 = arith.constant 0 : index
    %c0_0 = arith.constant 0 : index
    %0 = vector.load %arg5[%c0, %c0_0] : memref<8x128xf32, #tpu.memory_space<vmem>>, vector<8x128xf32>
    %1 = vector.extract_strided_slice %0 {offsets = [0, 0], sizes = [1, 128], strides = [1, 1]} : vector<8x128xf32> to vector<1x128xf32>
    %2 = vector.extract_strided_slice %0 {offsets = [1, 0], sizes = [1, 128], strides = [1, 1]} : vector<8x128xf32> to vector<1x128xf32>
    %3 = vector.extract_strided_slice %0 {offsets = [2, 0], sizes = [1, 128], strides = [1, 1]} : vector<8x128xf32> to vector<1x128xf32>
    %4 = vector.extract_strided_slice %0 {offsets = [3, 0], sizes = [1, 128], strides = [1, 1]} : vector<8x128xf32> to vector<1x128xf32>
    %5 = vector.extract_strided_slice %0 {offsets = [4, 0], sizes = [1, 128], strides = [1, 1]} : vector<8x128xf32> to vector<1x128xf32>
    %6 = vector.extract_strided_slice %0 {offsets = [5, 0], sizes = [1, 128], strides = [1, 1]} : vector<8x128xf32> to vector<1x128xf32>
    %7 = vector.extract_strided_slice %0 {offsets = [6, 0], sizes = [1, 128], strides = [1, 1]} : vector<8x128xf32> to vector<1x128xf32>
    %c0_1 = arith.constant 0 : index
    %c0_2 = arith.constant 0 : index
    %8 = vector.load %arg1[%c0_1, %c0_2] : memref<16x8xf32, #tpu.memory_space<vmem>>, vector<16x8xf32>
    %9 = arith.truncf %8 : vector<16x8xf32> to vector<16x8xbf16>
    %c0_3 = arith.constant 0 : index
    %c0_4 = arith.constant 0 : index
    %10 = vector.load %arg2[%c0_3, %c0_4] : memref<8x128xbf16, #tpu.memory_space<vmem>>, vector<8x128xbf16>
    %cst = arith.constant dense<0.000000e+00> : vector<16x128xf32>
    %11 = tpu.matmul %9, %10, %cst {dimension_numbers = #tpu.dot_dimension_numbers<[1], [0], [0], [1], [0, 0, 1, 1], [], []>} : vector<16x8xbf16>, vector<8x128xbf16>, vector<16x128xf32> -> vector<16x128xf32>
    %12 = vector.broadcast %1 : vector<1x128xf32> to vector<16x128xf32>
    %13 = arith.addf %11, %12 : vector<16x128xf32>
    %cst_5 = arith.constant 0.000000e+00 : f32
    %14 = vector.broadcast %cst_5 : f32 to vector<16x128xf32>
    %15 = arith.maximumf %13, %14 : vector<16x128xf32>
    %cst_6 = arith.constant dense<0.000000e+00> : vector<128xf32>
    %16 = vector.multi_reduction <add>, %15, %cst_6 [0] : vector<16x128xf32> to vector<128xf32>
    %17 = vector.shape_cast %16 : vector<128xf32> to vector<1x128xf32>
    %cst_7 = arith.constant 1.600000e+01 : f32
    %18 = vector.broadcast %cst_7 : f32 to vector<1x128xf32>
    %19 = arith.divf %17, %18 : vector<1x128xf32>
    %20 = arith.mulf %15, %15 : vector<16x128xf32>
    %cst_8 = arith.constant dense<0.000000e+00> : vector<128xf32>
    %21 = vector.multi_reduction <add>, %20, %cst_8 [0] : vector<16x128xf32> to vector<128xf32>
    %22 = vector.shape_cast %21 : vector<128xf32> to vector<1x128xf32>
    %cst_9 = arith.constant 1.600000e+01 : f32
    %23 = vector.broadcast %cst_9 : f32 to vector<1x128xf32>
    %24 = arith.divf %22, %23 : vector<1x128xf32>
    %25 = arith.mulf %19, %19 : vector<1x128xf32>
    %26 = arith.subf %24, %25 : vector<1x128xf32>
    %cst_10 = arith.constant 9.99999974E-6 : f32
    %27 = vector.broadcast %cst_10 : f32 to vector<1x128xf32>
    %28 = arith.addf %26, %27 : vector<1x128xf32>
    %29 = math.rsqrt %28 : vector<1x128xf32>
    %30 = arith.mulf %2, %29 : vector<1x128xf32>
    %31 = vector.broadcast %30 : vector<1x128xf32> to vector<16x128xf32>
    %32 = arith.mulf %15, %31 : vector<16x128xf32>
    %33 = arith.mulf %19, %30 : vector<1x128xf32>
    %34 = arith.subf %3, %33 : vector<1x128xf32>
    %35 = vector.broadcast %34 : vector<1x128xf32> to vector<16x128xf32>
    %36 = arith.addf %32, %35 : vector<16x128xf32>
    %37 = arith.truncf %36 : vector<16x128xf32> to vector<16x128xbf16>
    %c0_11 = arith.constant 0 : index
    %c0_12 = arith.constant 0 : index
    %38 = vector.load %arg3[%c0_11, %c0_12] : memref<128x128xbf16, #tpu.memory_space<vmem>>, vector<128x128xbf16>
    %cst_13 = arith.constant dense<0.000000e+00> : vector<16x128xf32>
    %39 = tpu.matmul %37, %38, %cst_13 {dimension_numbers = #tpu.dot_dimension_numbers<[1], [0], [0], [1], [0, 0, 1, 1], [], []>} : vector<16x128xbf16>, vector<128x128xbf16>, vector<16x128xf32> -> vector<16x128xf32>
    %40 = vector.broadcast %4 : vector<1x128xf32> to vector<16x128xf32>
    %41 = arith.addf %39, %40 : vector<16x128xf32>
    %cst_14 = arith.constant 0.000000e+00 : f32
    %42 = vector.broadcast %cst_14 : f32 to vector<16x128xf32>
    %43 = arith.maximumf %41, %42 : vector<16x128xf32>
    %cst_15 = arith.constant dense<0.000000e+00> : vector<128xf32>
    %44 = vector.multi_reduction <add>, %43, %cst_15 [0] : vector<16x128xf32> to vector<128xf32>
    %45 = vector.shape_cast %44 : vector<128xf32> to vector<1x128xf32>
    %cst_16 = arith.constant 1.600000e+01 : f32
    %46 = vector.broadcast %cst_16 : f32 to vector<1x128xf32>
    %47 = arith.divf %45, %46 : vector<1x128xf32>
    %48 = arith.mulf %43, %43 : vector<16x128xf32>
    %cst_17 = arith.constant dense<0.000000e+00> : vector<128xf32>
    %49 = vector.multi_reduction <add>, %48, %cst_17 [0] : vector<16x128xf32> to vector<128xf32>
    %50 = vector.shape_cast %49 : vector<128xf32> to vector<1x128xf32>
    %cst_18 = arith.constant 1.600000e+01 : f32
    %51 = vector.broadcast %cst_18 : f32 to vector<1x128xf32>
    %52 = arith.divf %50, %51 : vector<1x128xf32>
    %53 = arith.mulf %47, %47 : vector<1x128xf32>
    %54 = arith.subf %52, %53 : vector<1x128xf32>
    %cst_19 = arith.constant 9.99999974E-6 : f32
    %55 = vector.broadcast %cst_19 : f32 to vector<1x128xf32>
    %56 = arith.addf %54, %55 : vector<1x128xf32>
    %57 = math.rsqrt %56 : vector<1x128xf32>
    %58 = arith.mulf %5, %57 : vector<1x128xf32>
    %59 = vector.broadcast %58 : vector<1x128xf32> to vector<16x128xf32>
    %60 = arith.mulf %43, %59 : vector<16x128xf32>
    %61 = arith.mulf %47, %58 : vector<1x128xf32>
    %62 = arith.subf %6, %61 : vector<1x128xf32>
    %63 = vector.broadcast %62 : vector<1x128xf32> to vector<16x128xf32>
    %64 = arith.addf %60, %63 : vector<16x128xf32>
    %c0_20 = arith.constant 0 : index
    %65 = memref.load %arg0[%c0_20] : memref<1xi32, #tpu.memory_space<smem>>
    %66 = tpu.iota {dimensions = array<i32: 0>} : vector<16x128xi32>
    %67 = tpu.iota {dimensions = array<i32: 1>} : vector<16x128xi32>
    %c-1640531535_i32 = arith.constant -1640531535 : i32
    %68 = vector.broadcast %c-1640531535_i32 : i32 to vector<16x128xi32>
    %69 = arith.muli %66, %68 : vector<16x128xi32>
    %c-2048144777_i32 = arith.constant -2048144777 : i32
    %70 = vector.broadcast %c-2048144777_i32 : i32 to vector<16x128xi32>
    %71 = arith.muli %67, %70 : vector<16x128xi32>
    %72 = arith.addi %69, %71 : vector<16x128xi32>
    %c-1028477379_i32 = arith.constant -1028477379 : i32
    %73 = arith.muli %65, %c-1028477379_i32 : i32
    %74 = vector.broadcast %73 : i32 to vector<16x128xi32>
    %75 = arith.addi %72, %74 : vector<16x128xi32>
    %c668265263_i32 = arith.constant 668265263 : i32
    %76 = vector.broadcast %c668265263_i32 : i32 to vector<16x128xi32>
    %77 = arith.addi %75, %76 : vector<16x128xi32>
    %c15_i32 = arith.constant 15 : i32
    %78 = vector.broadcast %c15_i32 : i32 to vector<16x128xi32>
    %79 = arith.shrui %77, %78 : vector<16x128xi32>
    %80 = arith.xori %77, %79 : vector<16x128xi32>
    %c739982445_i32 = arith.constant 739982445 : i32
    %81 = vector.broadcast %c739982445_i32 : i32 to vector<16x128xi32>
    %82 = arith.muli %80, %81 : vector<16x128xi32>
    %c12_i32 = arith.constant 12 : i32
    %83 = vector.broadcast %c12_i32 : i32 to vector<16x128xi32>
    %84 = arith.shrui %82, %83 : vector<16x128xi32>
    %85 = arith.xori %82, %84 : vector<16x128xi32>
    %c695872825_i32 = arith.constant 695872825 : i32
    %86 = vector.broadcast %c695872825_i32 : i32 to vector<16x128xi32>
    %87 = arith.muli %85, %86 : vector<16x128xi32>
    %c15_i32_21 = arith.constant 15 : i32
    %88 = vector.broadcast %c15_i32_21 : i32 to vector<16x128xi32>
    %89 = arith.shrui %87, %88 : vector<16x128xi32>
    %90 = arith.xori %87, %89 : vector<16x128xi32>
    %c9_i32 = arith.constant 9 : i32
    %91 = vector.broadcast %c9_i32 : i32 to vector<16x128xi32>
    %92 = arith.shrui %90, %91 : vector<16x128xi32>
    %c838861_i32 = arith.constant 838861 : i32
    %93 = vector.broadcast %c838861_i32 : i32 to vector<16x128xi32>
    %94 = arith.cmpi sge, %92, %93 : vector<16x128xi32>
    %95 = arith.extui %94 : vector<16x128xi1> to vector<16x128xi32>
    %96 = arith.sitofp %95 : vector<16x128xi32> to vector<16x128xf32>
    %97 = arith.mulf %64, %96 : vector<16x128xf32>
    %cst_22 = arith.constant 1.11111116 : f32
    %98 = vector.broadcast %cst_22 : f32 to vector<16x128xf32>
    %99 = arith.mulf %97, %98 : vector<16x128xf32>
    %100 = arith.truncf %99 : vector<16x128xf32> to vector<16x128xbf16>
    %c0_23 = arith.constant 0 : index
    %c0_24 = arith.constant 0 : index
    %101 = vector.load %arg4[%c0_23, %c0_24] : memref<128x128xbf16, #tpu.memory_space<vmem>>, vector<128x128xbf16>
    %cst_25 = arith.constant dense<0.000000e+00> : vector<16x128xf32>
    %102 = tpu.matmul %100, %101, %cst_25 {dimension_numbers = #tpu.dot_dimension_numbers<[1], [0], [0], [1], [0, 0, 1, 1], [], []>} : vector<16x128xbf16>, vector<128x128xbf16>, vector<16x128xf32> -> vector<16x128xf32>
    %103 = vector.broadcast %7 : vector<1x128xf32> to vector<16x128xf32>
    %104 = arith.addf %102, %103 : vector<16x128xf32>
    %c0_26 = arith.constant 0 : index
    %c0_27 = arith.constant 0 : index
    %105 = vector.load %arg6[%c0_26, %c0_27] : memref<16x128xf32, #tpu.memory_space<vmem>>, vector<16x128xf32>
    tpu.vector_store %arg6[%c0_26, %c0_27], %104 {strides = array<i32>} : memref<16x128xf32, #tpu.memory_space<vmem>>, vector<16x128xf32>,
    return
  }
}

</mosaic_0001>

<bundles_post_ra>
// kernel: binary_classification_forward.1
= control target key start
LH: loop header
LB: loop body
LE: loop exit
PB: predicated region body
PF: predicated region fallthrough
CT: control target
= control target key end

     0   :  { %12 = vsyncpa [#allocation4], 0  ;;  %s784_s0 = inlined_call_operand.<no memory space> [shape: s32[1], index: 0, kind: input, shape index: {}]   ;;  %s785_s1 = inlined_call_operand.vmem [shape: f32[16,8], index: 1, kind: input, shape index: {}]   ;;  %s786_s2 = inlined_call_operand.hbm [shape: bf16[8,128], index: 2, kind: input, shape index: {}]   ;;  %s787_s3 = inlined_call_operand.vmem [shape: bf16[128,128], index: 3, kind: input, shape index: {}]   ;;  %s788_s4 = inlined_call_operand.hbm [shape: bf16[128,128], index: 4, kind: input, shape index: {}]   ;;  %s789_s5 = inlined_call_operand.vmem [shape: f32[8,128], index: 5, kind: input, shape index: {}]   ;;  %s790_s6 = inlined_call_operand.vmem [shape: f32[16,128], index: 6, kind: output, shape index: {}]  }
   0x1   :  { %13 = vsyncpa [#allocation6], 0  ;;  %s626_s21 = smov [#allocation3]   ;;  %s627_s23 = smov [#allocation5]  }
   0x2   :  { %s24_s22 = sshll.u32 %s626_s21, 4  ;;  %s35_s24 = sshll.u32 %s627_s23, 4  ;;  %s25_s22 = int_to_ptr.vmem [resolvable:$true] %s24_s22  ;;  %s667_s24 = int_to_ptr.vmem [resolvable:$true] %s35_s24 }
   0x3   :  { %s578_s27 = scalar_lea.hbm %s786_s2, 64 }
   0x4   :  { %p579_p0 = scmp.ne.s32.totalorder %s786_s2, %s578_s27  ;;  %p582_p1 = scmp.lt.u32.totalorder %s578_s27, %s786_s2 }
   0x6   :  { %p584_p2 = pnand %p582_p1, %p579_p0 }
   0x8   :  { %587 = shalt.err (!%p584_p2)
}
   0x9   :  { %s588_s8 = scalar_lea.vmem %s25_s22, 64  ;;  %p593_p4 = scmp.lt.s32.totalorder %s25_s22, %s25_s22 }
   0xa   :  { %p589_p3 = scmp.ne.s32.totalorder %s25_s22, %s588_s8  ;;  %p594_p5 = scmp.lt.s32.totalorder %s588_s8, %s588_s8 }
   0xc   :  { %p595_p6 = por %p594_p5, %p593_p4 }
   0xe   :  { %p596_p7 = pnand %p595_p6, %p589_p3 }
  0x10   :  { %599 = shalt.err (!%p596_p7)
}
  0x11   :  { %27 = dma.hbm_to_vmem [thread:$0]  %s786_s2, 64, %s25_s22, [#allocation4]  }
  0x12   :  { %s600_s13 = scalar_lea.hbm %s788_s4, 1024 }
  0x13   :  { %p601_p8 = scmp.ne.s32.totalorder %s788_s4, %s600_s13  ;;  %p604_p9 = scmp.lt.u32.totalorder %s600_s13, %s788_s4 }
  0x15   :  { %p606_p10 = pnand %p604_p9, %p601_p8 }
  0x17   :  { %609 = shalt.err (!%p606_p10)
}
  0x18   :  { %s610_s18 = scalar_lea.vmem %s667_s24, 1024  ;;  %p615_p12 = scmp.lt.s32.totalorder %s667_s24, %s667_s24 }
  0x19   :  { %p611_p11 = scmp.ne.s32.totalorder %s667_s24, %s610_s18  ;;  %p616_p13 = scmp.lt.s32.totalorder %s610_s18, %s610_s18 }
  0x1b   :  { %p617_p0 = por %p616_p13, %p615_p12 }
  0x1d   :  { %p618_p1 = pnand %p617_p0, %p611_p11 }
  0x1f   :  { %621 = shalt.err (!%p618_p1)
}
  0x20   :  { %s628_s2 = smov 64   ;;  %s629_s19 = smov 4  }
  0x21   :  { %41 = dma.hbm_to_vmem [thread:$0]  %s788_s4, 1024, %s667_s24, [#allocation6], %s628_s2, %s628_s2, %s629_s19  }
  0x22   :  { %622 = dma.done.wait [#allocation4], 64  }
  0x23   :  { %623 = vsyncadd [#allocation4], 4294967232 }
  0x24   :  { %624 = dma.done.wait [#allocation6], 1024  }
  0x25   :  { %625 = vsyncadd [#allocation6], 4294966272  ;;  %v630_v0 = vmov 0.0   ;;  %vm631_vm0 = vmmov 0   ;;  %vm64_vm1 = vcmask 1043456   ;;  %v52_v2 = vld [vmem:[%s785_s1] sm:$0xff]  ;;  %v56_v14 = vlaneseq }
  0x26   :  { %506 = vmatprep.subr.bf16.mxu0 %v630_v0  ;;  %508 = vmatprep.mubr.msk.bf16.mxu0 %vm631_vm0, %v630_v0  ;;  %v55_v1 = vld [vmem:[#allocation3] sm:$0xf]  ;;  %v53_v3 = vld [vmem:[%s785_s1 + $0x8] sm:$0xff]  ;;  %vm60_vm2 = vcmask 64512   ;;  %v560_v8 = vld [vmem:[%s787_s3 + $0x10] sm:$0xff]  }
  0x27   :  { %512 = vmatprep.subr.bf16.mxu1 %v630_v0  ;;  %528 = vmatprep.mubr.msk.bf16.mxu1 %vm631_vm0, %v630_v0  ;;  %v66_v4 = vsel %vm64_vm1, %v55_v1, 0  ;;  %v54_v5 = vpack.c.bf16 %v53_v3, %v52_v2  ;;  %v558_v6 = vld [vmem:[%s787_s3] sm:$0xff]   ;;  %v559_v7 = vld [vmem:[%s787_s3 + $0x8] sm:$0xff]   ;;  %v561_v9 = vld [vmem:[%s787_s3 + $0x18] sm:$0xff]   ;;  %v742_v15 = vshrl.u32 %v56_v14, 7 }
  0x28   :  { %507 = vmatpush3.bf16.msra.mxu0 %v66_v4  ;;  %513 = vmatpush3.bf16.msra.mxu1 %v558_v6  ;;  %v562_v10 = vld [vmem:[%s787_s3 + $0x20] sm:$0xff]   ;;  %v563_v11 = vld [vmem:[%s787_s3 + $0x28] sm:$0xff]   ;;  %v564_v12 = vld [vmem:[%s787_s3 + $0x30] sm:$0xff]   ;;  %s315_s18 = smul.u32 3266489917, %s784_s0 }
  0x29   :  { %532 = vmatprep.subr.bf16.mxu0 %v630_v0  ;;  %514 = vmatprep.subr.bf16.mxu1 %v630_v0  ;;  %v565_v13 = vld [vmem:[%s787_s3 + $0x38] sm:$0xff]   ;;  %v58_v16 = vsub.s32 0, %v742_v15  ;;  %v748_v17 = vld [vmem:[%s789_s5] sm:$0xff]  ;;  %v137_v48 = vsub.s32 1, %v742_v15  ;;  %v148_v56 = vsub.s32 2, %v742_v15  ;;  %v567_v63 = vld [vmem:[#allocation5 + $0x8] sm:$0xff]  }
  0x2a   :  { %v566_v62 = vld [vmem:[#allocation5] sm:$0xff]   ;;  %v568_v1 = vld [vmem:[#allocation5 + $0x10] sm:$0xff]   ;;  %v569_v2 = vld [vmem:[#allocation5 + $0x18] sm:$0xff]  }
  0x2b   :  { %509 = vmatmul.mubr.msk.bf16.vlgmr.msra.gmra.mrb[0].mxu0 %vm60_vm2, %v54_v5  ;;  %v59_v18 = vrot.slane %v748_v17, %v58_v16  ;;  %v570_v3 = vld [vmem:[#allocation5 + $0x20] sm:$0xff]   ;;  %v571_v4 = vld [vmem:[#allocation5 + $0x28] sm:$0xff]   ;;  %v572_v5 = vld [vmem:[#allocation5 + $0x30] sm:$0xff]  }
  0x2c   :  { %548 = vmatprep.mubr.msk.bf16.mxu0 %vm631_vm0, %v630_v0  ;;  %515 = vmatpush3.bf16.msra.mxu1 %v559_v7  ;;  %v573_v6 = vld [vmem:[#allocation5 + $0x38] sm:$0xff]   ;;  %v307_v7 = vadd.s32 8, %v742_v15 }
  0x2d   :  { %516 = vmatprep.subr.bf16.mxu1 %v630_v0  ;;  %533 = vmatpush3.bf16.msra.mxu0 %v566_v62 }
  0x2e   :  { %534 = vmatprep.subr.bf16.mxu0 %v630_v0 }
  0x30   :  { %517 = vmatpush3.bf16.msra.mxu1 %v560_v8  ;;  %v309_v8 = vand.u32 127, %v56_v14 }
  0x31   :  { %518 = vmatprep.subr.bf16.mxu1 %v630_v0  ;;  %535 = vmatpush3.bf16.msra.mxu0 %v567_v63 }
  0x32   :  { %536 = vmatprep.subr.bf16.mxu0 %v630_v0 }
  0x34   :  { %519 = vmatpush3.bf16.msra.mxu1 %v561_v9  ;;  %v171_v9 = vsub.s32 3, %v742_v15 }
  0x35   :  { %520 = vmatprep.subr.bf16.mxu1 %v630_v0  ;;  %537 = vmatpush3.bf16.msra.mxu0 %v568_v1 }
  0x36   :  { %538 = vmatprep.subr.bf16.mxu0 %v630_v0 }
  0x38   :  { %521 = vmatpush3.bf16.msra.mxu1 %v562_v10  ;;  %v311_v10 = vmul.u32 2654435761, %v307_v7 }
  0x39   :  { %522 = vmatprep.subr.bf16.mxu1 %v630_v0  ;;  %539 = vmatpush3.bf16.msra.mxu0 %v569_v2 }
  0x3a   :  { %540 = vmatprep.subr.bf16.mxu0 %v630_v0 }
  0x3c   :  { %523 = vmatpush3.bf16.msra.mxu1 %v563_v11  ;;  %v312_v11 = vmul.u32 2246822519, %v309_v8 }
  0x3d   :  { %524 = vmatprep.subr.bf16.mxu1 %v630_v0  ;;  %541 = vmatpush3.bf16.msra.mxu0 %v570_v3  ;;  %v289_v3 = vsub.s32 4, %v742_v15 }
  0x3e   :  { %542 = vmatprep.subr.bf16.mxu0 %v630_v0  ;;  %v314_v16 = vadd.s32 %v312_v11, %v311_v10 }
  0x40   :  { %525 = vmatpush3.bf16.msra.mxu1 %v564_v12  ;;  %v310_v12 = vmul.u32 2654435761, %v742_v15 }
  0x41   :  { %526 = vmatprep.subr.bf16.mxu1 %v630_v0  ;;  %543 = vmatpush3.bf16.msra.mxu0 %v571_v4 }
  0x42   :  { %544 = vmatprep.subr.bf16.mxu0 %v630_v0 }
  0x44   :  { %527 = vmatpush3.bf16.msra.mxu1 %v565_v13  ;;  %v172_v13 = vrot.slane %v748_v17, %v171_v9 }
  0x45   :  { %545 = vmatpush3.bf16.msra.mxu0 %v572_v5 }
  0x46   :  { %546 = vmatprep.subr.bf16.mxu0 %v630_v0 }
  0x49   :  { %547 = vmatpush3.bf16.msra.mxu0 %v573_v6 }
  0xfe   :  { %v102_v19 = vpop.f32.mrb[0].mxu0 }
  0xff   :  { %v103_v20 = vadd.f32 %v102_v19, %v59_v18  ;;  %v510_v21 = vpop.f32.mrb[1].mxu0  ;;  %v316_v19 = vstv %s315_s18 }
 0x100   :  { %v105_v22 = vpop.f32.mrb[2].mxu0  ;;  %v318_v14 = vadd.s32 %v316_v19, %v314_v16 }
 0x101   :  { %v109_v23 = vmax.f32 %v103_v20, 0.0  ;;  %v106_v24 = vadd.f32 %v105_v22, %v59_v18  ;;  %v511_v25 = vpop.f32.mrb[3].mxu0  ;;  %v313_v18 = vadd.s32 %v312_v11, %v310_v12 }
 0x103   :  { %v110_v26 = vmax.f32 %v106_v24, 0.0  ;;  %v120_v27 = vmul.f32 %v109_v23, %v109_v23  ;;  %v317_v24 = vadd.s32 %v316_v19, %v313_v18  ;;  %v300_v18 = vsub.s32 5, %v742_v15 }
 0x105   :  { %v111_v28 = vadd.f32 %v110_v26, %v109_v23  ;;  %v121_v29 = vmul.f32 %v110_v26, %v110_v26 }
 0x107   :  { %v112_v30 = vrot.slane %v111_v28, 4  ;;  %v122_v31 = vadd.f32 %v121_v29, %v120_v27  ;;  %v320_v29 = vadd.s32 668265263, %v318_v14 }
 0x109   :  { %v113_v32 = vadd.f32 %v112_v30, %v111_v28  ;;  %v123_v33 = vrot.slane %v122_v31, 4  ;;  %v319_v30 = vadd.s32 668265263, %v317_v24 }
 0x10b   :  { %v114_v34 = vrot.slane %v113_v32, 2  ;;  %v124_v35 = vadd.f32 %v123_v33, %v122_v31 }
 0x10d   :  { %v115_v36 = vadd.f32 %v114_v34, %v113_v32  ;;  %v125_v37 = vrot.slane %v124_v35, 2 }
 0x10f   :  { %v116_v38 = vrot.slane %v115_v36, 1  ;;  %v126_v39 = vadd.f32 %v125_v37, %v124_v35  ;;  %v321_v37 = vshrl.u32 %v319_v30, 15 }
 0x111   :  { %v117_v40 = vadd.f32 %v116_v38, %v115_v36  ;;  %v127_v41 = vrot.slane %v126_v39, 1  ;;  %v322_v36 = vshrl.u32 %v320_v29, 15 }
 0x113   :  { %v119_v42 = vmul.f32 0.0625, %v117_v40  ;;  %v128_v43 = vadd.f32 %v127_v41, %v126_v39 }
 0x115   :  { %v129_v44 = vmul.f32 0.0625, %v128_v43  ;;  %v130_v45 = vmul.f32 %v119_v42, %v119_v42  ;;  %v323_v43 = vxor.u32 %v321_v37, %v319_v30 }
 0x117   :  { %v131_v46 = vsub.f32 %v129_v44, %v130_v45 }
 0x119   :  { %v132_v47 = vadd.f32 1e-05, %v131_v46 }
 0x11b   :  { %574 = vrsqrt.f32 %v132_v47 }
 0x125   :  { %v575_v49 = vpop.eup %574 }
 0x126   :  { %v134_v50 = vmul.f32 %v575_v49, %v748_v17  ;;  %v325_v49 = vmul.u32 739982445, %v323_v43 }
 0x128   :  { %v138_v51 = vrot.slane %v134_v50, %v137_v48  ;;  %v141_v52 = vmul.f32 %v134_v50, %v119_v42  ;;  %v324_v42 = vxor.u32 %v322_v36, %v320_v29 }
 0x12a   :  { %v140_v53 = vmul.f32 %v138_v51, %v110_v26  ;;  %v139_v54 = vmul.f32 %v138_v51, %v109_v23  ;;  %v143_v55 = vrot.slane %v141_v52, 7  ;;  %v326_v48 = vmul.u32 739982445, %v324_v42 }
 0x12c   :  { %v145_v57 = vsub.f32 %v748_v17, %v143_v55  ;;  %v327_v55 = vshrl.u32 %v325_v49, 12 }
 0x12e   :  { %v149_v58 = vrot.slane %v145_v57, %v148_v56 }
 0x130   :  { %v150_v59 = vadd.f32 %v149_v58, %v139_v54  ;;  %v151_v60 = vadd.f32 %v149_v58, %v140_v53  ;;  %v328_v54 = vshrl.u32 %v326_v48, 12 }
 0x132   :  { %v152_v61 = vpack.c.bf16 %v151_v60, %v150_v59  ;;  %v330_v59 = vxor.u32 %v328_v54, %v326_v48  ;;  %v329_v60 = vxor.u32 %v327_v55, %v325_v49 }
 0x134   :  { %529 = vmatmul.mubr.bf16.vlgmr.msra.gmra.mrb[0].mxu1 %v152_v61  ;;  %v332_v62 = vmul.u32 695872825, %v330_v59  ;;  %v331_v63 = vmul.u32 695872825, %v329_v60 }
 0x136   :  { %v334_v1 = vshrl.u32 %v332_v62, 15  ;;  %v333_v2 = vshrl.u32 %v331_v63, 15 }
 0x138   :  { %v336_v4 = vxor.u32 %v334_v1, %v332_v62  ;;  %v335_v5 = vxor.u32 %v333_v2, %v331_v63 }
 0x13a   :  { %v338_v10 = vshrl.u32 %v336_v4, 9  ;;  %v337_v11 = vshrl.u32 %v335_v5, 9 }
 0x13c   :  { %vm340_vm3 = vcmp.ge.s32.totalorder %v338_v10, 838861  ;;  %vm339_vm4 = vcmp.ge.s32.totalorder %v337_v11, 838861 }
 0x207   :  { %v255_v20 = vpop.f32.mrb[0].mxu1 }
 0x208   :  { %v256_v21 = vadd.f32 %v255_v20, %v172_v13  ;;  %v530_v22 = vpop.f32.mrb[1].mxu1 }
 0x209   :  { %v258_v23 = vpop.f32.mrb[2].mxu1  ;;  %v476_v22 = vsel %vm339_vm4, 1.0, %v630_v0 }
 0x20a   :  { %v262_v25 = vmax.f32 %v256_v21, 0.0  ;;  %v259_v26 = vadd.f32 %v258_v23, %v172_v13  ;;  %v531_v27 = vpop.f32.mrb[3].mxu1  ;;  %v477_v21 = vsel %vm340_vm3, 1.0, %v630_v0 }
 0x20c   :  { %v263_v28 = vmax.f32 %v259_v26, 0.0  ;;  %v272_v31 = vmul.f32 %v262_v25, %v262_v25 }
 0x20e   :  { %v264_v32 = vadd.f32 %v263_v28, %v262_v25  ;;  %v273_v33 = vmul.f32 %v263_v28, %v263_v28 }
 0x210   :  { %v265_v34 = vrot.slane %v264_v32, 4  ;;  %v274_v35 = vadd.f32 %v273_v33, %v272_v31 }
 0x212   :  { %v266_v38 = vadd.f32 %v265_v34, %v264_v32  ;;  %v275_v39 = vrot.slane %v274_v35, 4 }
 0x214   :  { %v267_v40 = vrot.slane %v266_v38, 2  ;;  %v276_v41 = vadd.f32 %v275_v39, %v274_v35 }
 0x216   :  { %v268_v44 = vadd.f32 %v267_v40, %v266_v38  ;;  %v277_v45 = vrot.slane %v276_v41, 2 }
 0x218   :  { %v269_v46 = vrot.slane %v268_v44, 1  ;;  %v278_v47 = vadd.f32 %v277_v45, %v276_v41 }
 0x21a   :  { %v270_v50 = vadd.f32 %v269_v46, %v268_v44  ;;  %v279_v51 = vrot.slane %v278_v47, 1 }
 0x21c   :  { %v271_v52 = vmul.f32 0.0625, %v270_v50  ;;  %v280_v53 = vadd.f32 %v279_v51, %v278_v47 }
 0x21e   :  { %v281_v56 = vmul.f32 0.0625, %v280_v53  ;;  %v282_v57 = vmul.f32 %v271_v52, %v271_v52 }
 0x220   :  { %v283_v58 = vsub.f32 %v281_v56, %v282_v57 }
 0x222   :  { %v284_v61 = vadd.f32 1e-05, %v283_v58 }
 0x224   :  { %576 = vrsqrt.f32 %v284_v61 }
 0x22e   :  { %v577_v6 = vpop.eup %576 }
 0x22f   :  { %v286_v7 = vmul.f32 %v577_v6, %v748_v17 }
 0x231   :  { %v290_v8 = vrot.slane %v286_v7, %v289_v3  ;;  %v293_v9 = vmul.f32 %v286_v7, %v271_v52 }
 0x233   :  { %v291_v12 = vmul.f32 %v290_v8, %v262_v25  ;;  %v292_v13 = vmul.f32 %v290_v8, %v263_v28  ;;  %v295_v16 = vrot.slane %v293_v9, 7  ;;  %v368_v28 = vsub.s32 6, %v742_v15 }
 0x235   :  { %v297_v19 = vsub.f32 %v748_v17, %v295_v16  ;;  %v369_v30 = vrot.slane %v748_v17, %v368_v28 }
 0x237   :  { %v301_v20 = vrot.slane %v297_v19, %v300_v18 }
 0x239   :  { %v302_v23 = vadd.f32 %v301_v20, %v291_v12  ;;  %v303_v14 = vadd.f32 %v301_v20, %v292_v13 }
 0x23b   :  { %v346_v24 = vmul.f32 %v477_v21, %v303_v14  ;;  %v345_v26 = vmul.f32 %v476_v22, %v302_v23 }
 0x23d   :  { %v347_v27 = vmul.f32 1.1111112, %v345_v26  ;;  %v348_v29 = vmul.f32 1.1111112, %v346_v24 }
 0x23f   :  { %v349_v25 = vpack.c.bf16 %v348_v29, %v347_v27 }
 0x241   :  { %549 = vmatmul.mubr.bf16.vlgmr.msra.gmra.mrb[4].mxu0 %v349_v25 }
 0x314   :  { %v452_v31 = vpop.f32.mrb[4].mxu0 }
 0x315   :  { %v453_v32 = vadd.f32 %v452_v31, %v369_v30  ;;  %v550_v33 = vpop.f32.mrb[5].mxu0 }
 0x316   :  { %v455_v34 = vpop.f32.mrb[6].mxu0 }
 0x317   :  { %459 = vst [vmem:[%s790_s6] sm:$0xff] %v453_v32  ;;  %v456_v0 = vadd.f32 %v455_v34, %v369_v30  ;;  %v551_v35 = vpop.f32.mrb[7].mxu0 }
 0x319   :  { %460 = vst [vmem:[%s790_s6 + $0x8] sm:$0xff] %v456_v0 }
 0x31a   :  { %465 = vsyncpa [#allocation4], 1 }
 0x31b   :  { %466 = vsyncpa [#allocation6], 1 }

</bundles_post_ra>
